<compile_context>
chip_gen: v7x
topology: tpu7x:2x2x1
jax: 0.10.0
libtpu: 0.0.40
codegen_flags: <defaults>
</compile_context>

<pallas_src>
import functools

import jax
import jax.numpy as jnp
from jax.experimental import pallas as pl
from jax.experimental.pallas import tpu as pltpu


def _round_up(x, m):
    return ((x + m - 1) // m) * m


def _vmem_budgets():
    """Returns (vmem_limit_bytes, per-buffer input-tile budget) per generation."""
    cap = 128 * 1024 * 1024
    try:
        cap = int(pltpu.get_tpu_info().vmem_capacity_bytes)
    except Exception:
        pass  # fall back to the conservative 128 MiB assumption
    if cap <= 64 * 1024 * 1024:
        # v7x-class: 64 MiB physical VMEM per TensorCore.  Budget leaves room
        # for 2x the input tile (double buffering) plus the f32 strips the
        # compiler needs for the exp/LSE path.
        return 40 * 1024 * 1024, 8 * 1024 * 1024
    # v5e / v6e: 128 MiB physical VMEM — streaming kernel, go big.
    return 80 * 1024 * 1024, 16 * 1024 * 1024


def _pick_tile_n(n, c, dtype, per_buffer_budget):
    """Largest row-aligned TILE_N whose (TILE_N, C) buffer fits the byte budget
    (the pipeline double-buffers it).  Byte-targeted, no fixed row cap."""
    itemsize = jnp.dtype(dtype).itemsize
    row_align = 16 if itemsize < 4 else 8      # bf16 packs two rows per sublane
    per_row_bytes = max(c * itemsize, 1)
    t = per_buffer_budget // per_row_bytes
    t = min(t, _round_up(n, row_align))
    t = (t // row_align) * row_align
    return max(t, row_align)


def _label_smoothing_ce_partial_kernel(preds_ref, tgt_ref, out_ref, *,
                                       tile_n, n_valid):
    x = preds_ref[...]                                  # (TILE_N, C) native dtype
    tgt = tgt_ref[...]                                  # (TILE_N, 1) int32
    n_cls = x.shape[-1]

    # Row max in the native dtype (bf16 VPU path on v6e/v7x), cast to f32 only
    # for the scalar-per-row LSE arithmetic.
    m = jnp.max(x, axis=-1, keepdims=True).astype(jnp.float32)        # (TILE_N,1)

    # sum_c x with f32 accumulation — no stored f32 upcast of the tile.
    sum_x = jnp.sum(x, axis=-1, keepdims=True, dtype=jnp.float32)     # (TILE_N,1)

    # x[target]: lane-iota compare + select in the native dtype; exactly one
    # element per row survives, so the f32-accumulated sum recovers it exactly.
    cls_ids = jax.lax.broadcasted_iota(jnp.int32, x.shape, 1)
    x_tgt = jnp.sum(jnp.where(cls_ids == tgt, x, jnp.zeros((), x.dtype)),
                    axis=-1, keepdims=True, dtype=jnp.float32)         # (TILE_N,1)

    # exp/LSE path stays in f32 (accuracy); the shift is fused into the exp
    # argument — no stored `shifted` tile.
    # TODO(synk): optional bf16 exp (f32 accumulation) on v7x if EUP binds.
    e = jnp.sum(jnp.exp(x.astype(jnp.float32) - m),
                axis=-1, keepdims=True)                                # (TILE_N,1)
    lse = m + jnp.log(e)                                               # (TILE_N,1)

    smooth = jnp.float32(n_cls) * lse - sum_x     # -sum_c log_softmax(x)[c]
    nll = lse - x_tgt                             # -log_softmax(x)[target]

    if n_valid is not None:
        # The last grid block is partial (no wrapper-side padding copy): rows
        # past n_valid hold undefined data.  A *select* discards them safely
        # even if they produced NaN/Inf above.
        row_ids = (pl.program_id(0) * tile_n +
                   jax.lax.broadcasted_iota(jnp.int32, (tile_n, 1), 0))
        valid = row_ids < n_valid
        smooth = jnp.where(valid, smooth, 0.0)
        nll = jnp.where(valid, nll, 0.0)

    smooth_p = jnp.sum(smooth)
    nll_p = jnp.sum(nll)

    # Lane-dense (8, 128) output block: [0, 0] = smooth partial, [1, 0] = nll
    # partial, zeros elsewhere.  Each grid step owns its own block, so the grid
    # axis stays "parallel" (shardable across v7x's two TensorCores).
    ri = jax.lax.broadcasted_iota(jnp.int32, (8, 128), 0)
    li = jax.lax.broadcasted_iota(jnp.int32, (8, 128), 1)
    tile_out = jnp.where((ri == 0) & (li == 0), smooth_p, jnp.float32(0.0))
    tile_out = jnp.where((ri == 1) & (li == 0), nll_p, tile_out)
    out_ref[...] = tile_out


def label_smoothing_cross_entropy(preds, target, epsilon: float = 0.1):
    """preds: (N, C) float logits (f32 or bf16); target: (N,) int class indices.

    Returns a scalar float32 (reduction='mean'), matching the PyTorch module.
    """
    n, c = preds.shape
    vmem_limit_bytes, per_buffer_budget = _vmem_budgets()
    tile_n = _pick_tile_n(n, c, preds.dtype, per_buffer_budget)
    num_tiles = pl.cdiv(n, tile_n)

    tgt2d = target.astype(jnp.int32).reshape(n, 1)
    n_valid = n if (n % tile_n) != 0 else None    # mask only when the last block is partial

    kernel = functools.partial(
        _label_smoothing_ce_partial_kernel, tile_n=tile_n, n_valid=n_valid)

    itemsize = jnp.dtype(preds.dtype).itemsize
    cost = pl.CostEstimate(
        flops=6 * n * c,
        transcendentals=n * c + n,
        bytes_accessed=n * c * itemsize + n * 4 + num_tiles * 8 * 128 * 4,
    )

    # TODO(synk): for vocab-scale C (>=64K classes) add an inner "arbitrary"
    # grid axis over C with an online logsumexp accumulator (flash-softmax
    # style) so TILE_N stays large on v7x's 64 MiB VMEM.
    partials = pl.pallas_call(
        kernel,
        out_shape=jax.ShapeDtypeStruct((num_tiles, 8, 128), jnp.float32),
        grid_spec=pltpu.PrefetchScalarGridSpec(
            num_scalar_prefetch=0,
            grid=(num_tiles,),
            in_specs=[
                pl.BlockSpec((tile_n, c), lambda i: (i, 0)),
                pl.BlockSpec((tile_n, 1), lambda i: (i, 0)),
            ],
            out_specs=pl.BlockSpec((None, 8, 128), lambda i: (i, 0, 0)),
        ),
        compiler_params=pltpu.CompilerParams(
            dimension_semantics=("parallel",),
            vmem_limit_bytes=vmem_limit_bytes,
        ),
        cost_estimate=cost,
    )(preds, tgt2d)

    # Finalize (mean over the true N, epsilon mix) in the surrounding graph.
    sums = jnp.sum(partials, axis=(0, 2))          # (8,); [0]=smooth, [1]=nll
    loss_mean = sums[0] / jnp.float32(n)
    nll_mean = sums[1] / jnp.float32(n)
    eps = jnp.float32(epsilon)
    return eps * (loss_mean / jnp.float32(c)) + (1.0 - eps) * nll_mean


def _reference(preds, target, epsilon=0.1):
    # Pure-JAX reference mirroring the PyTorch forward.
    logp = jax.nn.log_softmax(preds.astype(jnp.float32), axis=-1)
    loss = jnp.mean(-jnp.sum(logp, axis=-1))
    nll = jnp.mean(-logp[jnp.arange(preds.shape[0]), target])
    c = preds.shape[-1]
    return epsilon * (loss / c) + (1.0 - epsilon) * nll


if __name__ == "__main__":
    key = jax.random.PRNGKey(0)
    k1, k2, k3, k4 = jax.random.split(key, 4)

    # Case 1: small aligned shape (batch=8, classes=32), f32 logits.
    N, C = 8, 32
    preds = jax.random.normal(k1, (N, C), dtype=jnp.float32)
    target = jax.random.randint(k2, (N,), 0, C, dtype=jnp.int32)
    out = jax.block_until_ready(label_smoothing_cross_entropy(preds, target, 0.1))
    ref = _reference(preds, target, 0.1)
    assert jnp.allclose(out, ref, atol=1e-5, rtol=1e-5), (out, ref)

    # Case 2: unaligned batch — exercises the partial last block + in-kernel
    # row masking (no wrapper-side padding copy anymore).
    N2, C2 = 10, 48
    preds2 = jax.random.normal(k3, (N2, C2), dtype=jnp.float32)
    target2 = jax.random.randint(k4, (N2,), 0, C2, dtype=jnp.int32)
    out2 = jax.block_until_ready(label_smoothing_cross_entropy(preds2, target2, 0.1))
    ref2 = _reference(preds2, target2, 0.1)
    assert jnp.allclose(out2, ref2, atol=1e-5, rtol=1e-5), (out2, ref2)

    # Case 3: bf16 logits streamed as-is (half the HBM DMA traffic); max/select/
    # sum passes run in bf16, exp/LSE in f32.
    preds_bf16 = preds.astype(jnp.bfloat16)
    out3 = jax.block_until_ready(
        label_smoothing_cross_entropy(preds_bf16, target, 0.1))
    ref3 = _reference(preds_bf16, target, 0.1)
    assert jnp.allclose(out3, ref3, atol=1e-4, rtol=1e-4), (out3, ref3)

    print("KERNEL_OK")
</pallas_src>

<mosaic_0001>
module attributes {stable_mosaic.version = 11 : i64} {
  func.func @_label_smoothing_ce_partial_kernel(%arg0: i32, %arg1: memref<8x32xf32, #tpu.memory_space<vmem>>, %arg2: memref<8x1xi32, #tpu.memory_space<vmem>>, %arg3: memref<1x8x128xf32, #tpu.memory_space<vmem>>) attributes {dimension_semantics = [#tpu.dimension_semantics<parallel>], iteration_bounds = array<i64: 1>, scalar_prefetch = 0 : i64, scratch_operands = 0 : i64, tpu.core_type = #tpu.core_type<tc>, window_params = [{transform_indices = @transform_0, window_bounds = array<i64: 8, 32>}, {transform_indices = @transform_1, window_bounds = array<i64: 8, 1>}, {transform_indices = @transform_2, window_bounds = array<i64: 1, 8, 128>}]} {
    %c0 = arith.constant 0 : index
    %c0_0 = arith.constant 0 : index
    %0 = vector.load %arg1[%c0, %c0_0] : memref<8x32xf32, #tpu.memory_space<vmem>>, vector<8x32xf32>
    %c0_1 = arith.constant 0 : index
    %c0_2 = arith.constant 0 : index
    %1 = vector.load %arg2[%c0_1, %c0_2] : memref<8x1xi32, #tpu.memory_space<vmem>>, vector<8x1xi32>
    %cst = arith.constant dense<0xFF800000> : vector<8xf32>
    %2 = vector.multi_reduction <maximumf>, %0, %cst [1] : vector<8x32xf32> to vector<8xf32>
    %3 = vector.shape_cast %2 : vector<8xf32> to vector<8x1xf32>
    %cst_3 = arith.constant dense<0.000000e+00> : vector<8xf32>
    %4 = vector.multi_reduction <add>, %0, %cst_3 [1] : vector<8x32xf32> to vector<8xf32>
    %5 = vector.shape_cast %4 : vector<8xf32> to vector<8x1xf32>
    %6 = tpu.iota {dimensions = array<i32: 1>} : vector<8x32xi32>
    %7 = vector.broadcast %1 : vector<8x1xi32> to vector<8x32xi32>
    %8 = arith.cmpi eq, %6, %7 : vector<8x32xi32>
    %cst_4 = arith.constant 0.000000e+00 : f32
    %9 = vector.broadcast %cst_4 : f32 to vector<8x32xf32>
    %10 = arith.select %8, %0, %9 : vector<8x32xi1>, vector<8x32xf32>
    %cst_5 = arith.constant dense<0.000000e+00> : vector<8xf32>
    %11 = vector.multi_reduction <add>, %10, %cst_5 [1] : vector<8x32xf32> to vector<8xf32>
    %12 = vector.shape_cast %11 : vector<8xf32> to vector<8x1xf32>
    %13 = vector.broadcast %3 : vector<8x1xf32> to vector<8x32xf32>
    %14 = arith.subf %0, %13 : vector<8x32xf32>
    %15 = math.exp %14 : vector<8x32xf32>
    %cst_6 = arith.constant dense<0.000000e+00> : vector<8xf32>
    %16 = vector.multi_reduction <add>, %15, %cst_6 [1] : vector<8x32xf32> to vector<8xf32>
    %17 = vector.shape_cast %16 : vector<8xf32> to vector<8x1xf32>
    %18 = math.log %17 : vector<8x1xf32>
    %19 = arith.addf %3, %18 : vector<8x1xf32>
    %cst_7 = arith.constant 3.200000e+01 : f32
    %20 = vector.broadcast %cst_7 : f32 to vector<8x1xf32>
    %21 = arith.mulf %20, %19 : vector<8x1xf32>
    %22 = arith.subf %21, %5 : vector<8x1xf32>
    %23 = arith.subf %19, %12 : vector<8x1xf32>
    %24 = vector.shape_cast %22 : vector<8x1xf32> to vector<1x8x1xf32>
    %cst_8 = arith.constant dense<0.000000e+00> : vector<1xf32>
    %25 = vector.multi_reduction <add>, %24, %cst_8 [1, 2] : vector<1x8x1xf32> to vector<1xf32>
    %26 = vector.shape_cast %25 : vector<1xf32> to vector<1x1x1xf32>
    %27 = vector.extract %26[0, 0, 0] : f32 from vector<1x1x1xf32>
    %28 = vector.shape_cast %23 : vector<8x1xf32> to vector<1x8x1xf32>
    %cst_9 = arith.constant dense<0.000000e+00> : vector<1xf32>
    %29 = vector.multi_reduction <add>, %28, %cst_9 [1, 2] : vector<1x8x1xf32> to vector<1xf32>
    %30 = vector.shape_cast %29 : vector<1xf32> to vector<1x1x1xf32>
    %31 = vector.extract %30[0, 0, 0] : f32 from vector<1x1x1xf32>
    %32 = tpu.iota {dimensions = array<i32: 0>} : vector<8x128xi32>
    %33 = tpu.iota {dimensions = array<i32: 1>} : vector<8x128xi32>
    %c0_i32 = arith.constant 0 : i32
    %34 = vector.broadcast %c0_i32 : i32 to vector<8x128xi32>
    %35 = arith.cmpi eq, %32, %34 : vector<8x128xi32>
    %c0_i32_10 = arith.constant 0 : i32
    %36 = vector.broadcast %c0_i32_10 : i32 to vector<8x128xi32>
    %37 = arith.cmpi eq, %33, %36 : vector<8x128xi32>
    %38 = arith.andi %35, %37 : vector<8x128xi1>
    %cst_11 = arith.constant 0.000000e+00 : f32
    %39 = vector.broadcast %27 : f32 to vector<8x128xf32>
    %40 = vector.broadcast %cst_11 : f32 to vector<8x128xf32>
    %41 = arith.select %38, %39, %40 : vector<8x128xi1>, vector<8x128xf32>
    %c1_i32 = arith.constant 1 : i32
    %42 = vector.broadcast %c1_i32 : i32 to vector<8x128xi32>
    %43 = arith.cmpi eq, %32, %42 : vector<8x128xi32>
    %c0_i32_12 = arith.constant 0 : i32
    %44 = vector.broadcast %c0_i32_12 : i32 to vector<8x128xi32>
    %45 = arith.cmpi eq, %33, %44 : vector<8x128xi32>
    %46 = arith.andi %43, %45 : vector<8x128xi1>
    %47 = vector.broadcast %31 : f32 to vector<8x128xf32>
    %48 = arith.select %46, %47, %41 : vector<8x128xi1>, vector<8x128xf32>
    %c0_13 = arith.constant 0 : index
    %c0_14 = arith.constant 0 : index
    %c0_15 = arith.constant 0 : index
    %49 = vector.load %arg3[%c0_13, %c0_14, %c0_15] : memref<1x8x128xf32, #tpu.memory_space<vmem>>, vector<1x8x128xf32>
    %50 = vector.shape_cast %49 : vector<1x8x128xf32> to vector<8x128xf32>
    %51 = vector.shape_cast %48 : vector<8x128xf32> to vector<1x8x128xf32>
    tpu.vector_store %arg3[%c0_13, %c0_14, %c0_15], %51 {strides = array<i32>} : memref<1x8x128xf32, #tpu.memory_space<vmem>>, vector<1x8x128xf32>,
    return
  }
  func.func @transform_0(%arg0: i32) -> (i32, i32) {
    %c0_i32 = arith.constant 0 : i32
    %c0_i32_0 = arith.constant 0 : i32
    return %arg0, %c0_i32 : i32, i32
  }
  func.func @transform_1(%arg0: i32) -> (i32, i32) {
    %c0_i32 = arith.constant 0 : i32
    %c0_i32_0 = arith.constant 0 : i32
    return %arg0, %c0_i32 : i32, i32
  }
  func.func @transform_2(%arg0: i32) -> (i32, i32, i32) {
    %c0_i32 = arith.constant 0 : i32
    %c0_i32_0 = arith.constant 0 : i32
    %c0_i32_1 = arith.constant 0 : i32
    return %arg0, %c0_i32, %c0_i32_0 : i32, i32, i32
  }
}

</mosaic_0001>

<bundles_post_ra>
// kernel: tpu_custom_call.1
= control target key start
LH: loop header
LB: loop body
LE: loop exit
PB: predicated region body
PF: predicated region fallthrough
CT: control target
= control target key end

     0   :  { %7 = vsyncpa [#allocation3], 0  ;;  %s260_s0 = inlined_call_operand.hbm [shape: f32[8,32], index: 0, kind: input, shape index: {}]   ;;  %s261_s1 = inlined_call_operand.hbm [shape: s32[8,1], index: 1, kind: input, shape index: {}]   ;;  %s262_s2 = inlined_call_operand.hbm [shape: f32[1,8,128], index: 2, kind: output, shape index: {}]  }
   0x1   :  { %8 = vsyncpa [#allocation6], 0 }
   0x2   :  { %9 = vsyncpa [#allocation4], 0  ;;  %s201_s9 = smov [#allocation2]   ;;  %s202_s11 = smov [#allocation5]  }
   0x3   :  { %s16_s10 = sshll.u32 %s201_s9, 4  ;;  %s26_s12 = sshll.u32 %s202_s11, 4  ;;  %s17_s10 = int_to_ptr.vmem [resolvable:$true] %s16_s10  ;;  %s27_s12 = int_to_ptr.vmem [resolvable:$true] %s26_s12 }
   0x4   :  { %s129_s15 = scalar_lea.hbm %s260_s0, 128 }
   0x5   :  { %p130_p0 = scmp.ne.s32.totalorder %s260_s0, %s129_s15  ;;  %p133_p1 = scmp.lt.u32.totalorder %s129_s15, %s260_s0 }
   0x7   :  { %p135_p2 = pnand %p133_p1, %p130_p0 }
   0x9   :  { %138 = shalt.err (!%p135_p2)
}
   0xa   :  { %s139_s20 = scalar_lea.vmem %s17_s10, 128  ;;  %p144_p4 = scmp.lt.s32.totalorder %s17_s10, %s17_s10 }
   0xb   :  { %p140_p3 = scmp.ne.s32.totalorder %s17_s10, %s139_s20  ;;  %p145_p5 = scmp.lt.s32.totalorder %s139_s20, %s139_s20 }
   0xd   :  { %p146_p6 = por %p145_p5, %p144_p4 }
   0xf   :  { %p147_p7 = pnand %p146_p6, %p140_p3 }
  0x11   :  { %150 = shalt.err (!%p147_p7)
}
  0x12   :  { %19 = dma.hbm_to_vmem [thread:$0]  %s260_s0, 128, %s17_s10, [#allocation3]  }
  0x13   :  { %s151_s25 = scalar_lea.hbm %s261_s1, 128 }
  0x14   :  { %p152_p8 = scmp.ne.s32.totalorder %s261_s1, %s151_s25  ;;  %p155_p9 = scmp.lt.u32.totalorder %s151_s25, %s261_s1 }
  0x16   :  { %p157_p10 = pnand %p155_p9, %p152_p8 }
  0x18   :  { %160 = shalt.err (!%p157_p10)
}
  0x19   :  { %s161_s30 = scalar_lea.vmem %s27_s12, 128  ;;  %p166_p12 = scmp.lt.s32.totalorder %s27_s12, %s27_s12 }
  0x1a   :  { %p162_p11 = scmp.ne.s32.totalorder %s27_s12, %s161_s30  ;;  %p167_p13 = scmp.lt.s32.totalorder %s161_s30, %s161_s30 }
  0x1c   :  { %p168_p0 = por %p167_p13, %p166_p12 }
  0x1e   :  { %p169_p1 = pnand %p168_p0, %p162_p11 }
  0x20   :  { %172 = shalt.err (!%p169_p1)
}
  0x21   :  { %29 = dma.hbm_to_vmem [thread:$0]  %s261_s1, 128, %s27_s12, [#allocation6]  }
  0x22   :  { %195 = dma.done.wait [#allocation3], 128  }
  0x23   :  { %196 = vsyncadd [#allocation3], 4294967168 }
  0x24   :  { %197 = dma.done.wait [#allocation6], 128  }
  0x25   :  { %198 = vsyncadd [#allocation6], 4294967168  ;;  %v203_v0 = vmov 0   ;;  %vm38_vm0 = vcmask 261120   ;;  %v36_v1 = vld [vmem:[#allocation2] sm:$0xff]  ;;  %v37_v3 = vld [vmem:[#allocation5] sm:$0xff]  ;;  %v45_v7 = vlaneseq }
  0x26   :  { %124 = vset.pattern.permute.xlu0 %v203_v0  ;;  %v39_v2 = vsel %vm38_vm0, %v36_v1, -inf  ;;  %v42_v12 = vsel %vm38_vm0, %v36_v1, 0.0  ;;  %vm67_vm2 = vcmask 7168   ;;  %s204_s4 = smov [#allocation7]  }
  0x27   :  { %40 = vmax.xlane.f32.xlu0 %v39_v2  ;;  %v46_v8 = vand.u32 127, %v45_v7  ;;  %v89_v40 = vshrl.u32 %v45_v7, 7  ;;  %s106_s5 = sshll.u32 %s204_s4, 4  ;;  %s107_s5 = int_to_ptr.vmem [resolvable:$true] %s106_s5 }
  0x28   :  { %s173_s7 = scalar_lea.vmem %s107_s5, 128  ;;  %p178_p3 = scmp.lt.s32.totalorder %s107_s5, %s107_s5 }
  0x29   :  { %vm90_vm3 = vcmp.eq.s32.totalorder %v89_v40, 0  ;;  %vm91_vm4 = vcmp.eq.s32.totalorder %v46_v8, 0  ;;  %vm95_vm5 = vcmp.eq.s32.totalorder %v89_v40, 1  ;;  %p174_p2 = scmp.ne.s32.totalorder %s107_s5, %s173_s7  ;;  %p179_p4 = scmp.lt.s32.totalorder %s173_s7, %s173_s7 }
  0x2a   :  { %vm92_vm6 = vmand %vm90_vm3, %vm91_vm4 }
  0x2b   :  { %vm96_vm7 = vmand %vm95_vm5, %vm91_vm4  ;;  %p180_p5 = por %p179_p4, %p178_p3 }
  0x2d   :  { %p181_p6 = pnand %p180_p5, %p174_p2 }
  0x3d   :  { %48 = vperm.xlu0 %124, %v37_v3  }
  0xb4   :  { %v41_v4 = vpop.xlane.xlu0 %40 }
  0xb5   :  { %v55_v5 = vsub.f32 %v36_v1, %v41_v4 }
  0xb7   :  { %v56_v6 = vmul.f32 1.442695, %v55_v5 }
  0xb9   :  { %125 = vpow2.f32 %v56_v6 }
  0xbc   :  { %v49_v9 = vpop.permute.xlu0 %48 }
  0xbd   :  { %vm50_vm1 = vcmp.eq.s32.totalorder %v46_v8, %v49_v9 }
  0xbe   :  { %v51_v13 = vsel %vm50_vm1, %v36_v1, 0.0 }
  0xbf   :  { %v52_v14 = vsel %vm38_vm0, %v51_v13, 0.0 }
  0xc3   :  { %v126_v10 = vpop.eup %125 }
  0xc4   :  { %v58_v11 = vsel %vm38_vm0, %v126_v10, 0.0 }
  0xc5   :  { %59 = vadd.xlane.f32.xlu1 %v58_v11 }
  0xc9   :  { %43 = vadd.xlane.f32.xlu1 %v42_v12 }
  0xcd   :  { %53 = vadd.xlane.f32.xlu1 %v52_v14 }
 0x152   :  { %v60_v15 = vpop.xlane.xlu1 %59 }
 0x153   :  { %127 = vlog2.f32 %v60_v15 }
 0x156   :  { %v44_v17 = vpop.xlane.xlu1 %43 }
 0x15a   :  { %v54_v21 = vpop.xlane.xlu1 %53 }
 0x15d   :  { %v128_v16 = vpop.eup %127 }
 0x15e   :  { %v62_v18 = vmul.f32 0.6931472, %v128_v16 }
 0x160   :  { %v63_v19 = vadd.f32 %v62_v18, %v41_v4 }
 0x162   :  { %v64_v20 = vmul.f32 32.0, %v63_v19  ;;  %v66_v23 = vsub.f32 %v63_v19, %v54_v21 }
 0x164   :  { %v65_v22 = vsub.f32 %v64_v20, %v44_v17  ;;  %v78_v25 = vsel %vm67_vm2, %v66_v23, 0.0 }
 0x166   :  { %v68_v24 = vsel %vm67_vm2, %v65_v22, 0.0 }
 0x167   :  { %69 = vadd.xlane.f32.xlu1 %v68_v24 }
 0x16b   :  { %79 = vadd.xlane.f32.xlu1 %v78_v25 }
 0x1f4   :  { %v70_v26 = vpop.xlane.xlu1 %69 }
 0x1f5   :  { %v71_v27 = vrot.slane %v70_v26, 4 }
 0x1f7   :  { %v72_v28 = vadd.f32 %v71_v27, %v70_v26 }
 0x1f8   :  { %v80_v29 = vpop.xlane.xlu1 %79 }
 0x1f9   :  { %v73_v30 = vrot.slane %v72_v28, 2  ;;  %v81_v31 = vrot.slane %v80_v29, 4 }
 0x1fb   :  { %v82_v32 = vadd.f32 %v81_v31, %v80_v29  ;;  %v74_v33 = vadd.f32 %v73_v30, %v72_v28 }
 0x1fd   :  { %v83_v34 = vrot.slane %v82_v32, 2  ;;  %v75_v35 = vrot.slane %v74_v33, 1 }
 0x1ff   :  { %v84_v36 = vadd.f32 %v83_v34, %v82_v32  ;;  %v76_v37 = vadd.f32 %v75_v35, %v74_v33 }
 0x201   :  { %116 = vpush %v76_v37  ;;  %v85_v38 = vrot.slane %v84_v36, 1 }
 0x203   :  { %v86_v39 = vadd.f32 %v85_v38, %v84_v36 }
 0x205   :  { %118 = vpush %v86_v39 }
 0x232   :  { %s117_s1 = spop %116 }
 0x233   :  { %v93_v41 = vstv %s117_s1 }
 0x234   :  { %v94_v42 = vsel %vm92_vm6, %v93_v41, 0.0 }
 0x236   :  { %s119_s6 = spop %118 }
 0x237   :  { %v97_v43 = vstv %s119_s6 }
 0x238   :  { %v98_v44 = vsel %vm96_vm7, %v97_v43, %v94_v42 }
 0x239   :  { %99 = vst [vmem:[#allocation7] sm:$0xff] %v98_v44 }
 0x23a   :  { %184 = shalt.err (!%p181_p6)
}
 0x23b   :  { %s185_s10 = scalar_lea.hbm %s262_s2, 128 }
 0x23c   :  { %p186_p7 = scmp.ne.s32.totalorder %s262_s2, %s185_s10  ;;  %p189_p8 = scmp.lt.u32.totalorder %s185_s10, %s262_s2 }
 0x23e   :  { %p191_p9 = pnand %p189_p8, %p186_p7 }
 0x240   :  { %194 = shalt.err (!%p191_p9)
}
 0x241   :  { %109 = dma.vmem_to_hbm [thread:$0]  %s107_s5, 128, %s262_s2, [#allocation4]  }
 0x242   :  { %199 = dma.done.wait [#allocation4], 128  }
 0x243   :  { %200 = vsyncadd [#allocation4], 4294967168 }
 0x244   :  { %113 = vsyncpa [#allocation3], 1 }
 0x245   :  { %114 = vsyncpa [#allocation6], 1 }
 0x246   :  { %115 = vsyncpa [#allocation4], 1 }

</bundles_post_ra>
